<compile_context>
chip_gen: v5e
topology: v5e:2x2
jax: 0.10.0
libtpu: 0.0.40
codegen_flags: <defaults>
</compile_context>

<pallas_src>
import jax
import jax.numpy as jnp
from jax.experimental import pallas as pl
from jax.experimental.pallas import tpu as pltpu


def attention_kernel(x_ref, w_ref, o_ref, m_sc, l_sc, acc_sc):
    """One (batch-tile, seq-tile) step of pooling attention (online softmax).

    x_ref : (bt, st, H)  input block (VMEM)
    w_ref : (1, H)       Linear(H, 1) weight row (VMEM)
    o_ref : (bt, 1, H)   context output block (written on the last seq step)
    m_sc, l_sc : (bt, 1, 1) f32 running max / running normalizer
    acc_sc     : (bt, 1, H) f32 running weighted sum
    """
    j = pl.program_id(1)

    @pl.when(j == 0)
    def _init():
        m_sc[...] = jnp.full_like(m_sc, -jnp.inf)
        l_sc[...] = jnp.zeros_like(l_sc)
        acc_sc[...] = jnp.zeros_like(acc_sc)

    bt, _, h = x_ref.shape

    # Linear(H, 1) scores on the MXU, flash-attention style with a q=1 "query"
    # per row.  The scalar bias is omitted (softmax shift-invariance).
    w_row = jnp.broadcast_to(w_ref[...].astype(x_ref.dtype)[None], (bt, 1, h))
    s = jnp.einsum("bqh,bsh->bqs", w_row, x_ref[...],
                   preferred_element_type=jnp.float32)            # (bt, 1, st)

    # Online (streaming) softmax over the sequence axis.
    m_prev = m_sc[...]
    m_new = jnp.maximum(m_prev, jnp.max(s, axis=-1, keepdims=True))
    alpha = jnp.exp(m_prev - m_new)                               # (bt, 1, 1)
    p = jnp.exp(s - m_new)                                        # (bt, 1, st)
    l_sc[...] = alpha * l_sc[...] + jnp.sum(p, axis=-1, keepdims=True)

    # Weighted sum of x over this sequence tile, also on the MXU; x_ref is
    # re-read here (not held live across the softmax) so the astype / load
    # fuses into this consumer and no block-sized temporary is materialised.
    acc_sc[...] = alpha * acc_sc[...] + jnp.einsum(
        "bqs,bsh->bqh", p.astype(x_ref.dtype), x_ref[...],
        preferred_element_type=jnp.float32)                       # (bt, 1, H)
    m_sc[...] = m_new

    @pl.when(j == pl.num_programs(1) - 1)
    def _finalize():
        # Exact division -- one op per batch tile, hidden under the DMA.
        o_ref[...] = (acc_sc[...] / l_sc[...]).astype(o_ref.dtype)


def _budgets():
    """(target block bytes, VMEM limit bytes) -- safe on v5e / v6e / v7x."""
    vmem_phys = 128 * 1024 * 1024
    try:
        vmem_phys = int(pltpu.get_tpu_info().vmem_capacity_bytes)
    except Exception:
        pass
    vmem_limit = min(48 * 1024 * 1024, (vmem_phys * 3) // 4)
    target = max(4 * 1024 * 1024, vmem_limit // 6)   # ~8 MiB streamed blocks
    return target, vmem_limit


def _divisors(n):
    return [d for d in range(1, n + 1) if n % d == 0]


def _choose_tiles(batch, seq, hidden, itemsize, target_bytes, vmem_limit):
    """Pick (bt, st): bt | batch, st | seq, st a multiple of 8 or st == seq.

    Goals, in order: stay under the VMEM budget (accounting for (8,128) tile
    padding, double buffers and the f32 accumulators); make the streamed x
    block as large as possible without exceeding `target_bytes`; keep the
    batch ("parallel") grid axis at >= 2 steps (>= 4 for larger batches).
    """
    hp = -(-hidden // 128) * 128                      # lane-padded hidden
    budget = int(vmem_limit * 0.85)

    def x_block(bt, st):
        return bt * (-(-st // 8) * 8) * hp * itemsize

    def vmem_total(bt, st):
        xb = x_block(bt, st)
        ob = bt * 8 * hp * itemsize                   # (bt,1,H) out block, padded
        acc = bt * 8 * hp * 4                         # f32 weighted-sum scratch
        ml = 2 * bt * 8 * 128 * 4                     # m, l scratch
        wb = 8 * hp * itemsize                        # weight block
        return 2 * xb + 2 * ob + acc + ml + 2 * wb

    min_bsteps = 4 if batch >= 32 else min(batch, 2)
    st_opts = [d for d in _divisors(seq) if d % 8 == 0 or d == seq]
    bt_opts = _divisors(batch)

    best, best_key = None, None
    for st in st_opts:
        for bt in bt_opts:
            if vmem_total(bt, st) > budget:
                continue
            xb = x_block(bt, st)
            fits = xb <= target_bytes
            key = (batch // bt >= min_bsteps,         # keep the parallel axis busy
                   fits,                              # don't overshoot the target
                   xb if fits else -xb,               # biggest (or least-oversized)
                   st)                                # fewest online-softmax passes
            if best_key is None or key > best_key:
                best, best_key = (bt, st), key
    if best is None:                                  # pathological fallback
        best = (1, min(st_opts) if st_opts else seq)
    return best


def attention_forward(x, w, b=None):
    """x: (B, S, H), w: (1, H), b: (1, 1) -> context: (B, H).

    The Linear bias is accepted for API parity but not sent to the kernel:
    softmax over the sequence axis is shift-invariant, so it cancels exactly.
    """
    del b
    B, S, H = x.shape
    target_bytes, vmem_limit = _budgets()
    bt, st = _choose_tiles(B, S, H, x.dtype.itemsize, target_bytes, vmem_limit)
    grid = (B // bt, S // st)

    out = pl.pallas_call(
        attention_kernel,
        out_shape=jax.ShapeDtypeStruct((B, 1, H), x.dtype),
        grid_spec=pltpu.PrefetchScalarGridSpec(
            num_scalar_prefetch=0,
            grid=grid,
            in_specs=[
                pl.BlockSpec((bt, st, H), lambda i, j: (i, j, 0)),
                pl.BlockSpec((1, H), lambda i, j: (0, 0)),
            ],
            out_specs=pl.BlockSpec((bt, 1, H), lambda i, j: (i, 0, 0)),
            scratch_shapes=[
                pltpu.VMEM((bt, 1, 1), jnp.float32),   # running max
                pltpu.VMEM((bt, 1, 1), jnp.float32),   # running normalizer
                pltpu.VMEM((bt, 1, H), jnp.float32),   # running weighted sum
            ],
        ),
        compiler_params=pltpu.CompilerParams(
            dimension_semantics=("parallel", "arbitrary"),
            vmem_limit_bytes=vmem_limit,
        ),
    )(x, w)
    return out.reshape(B, H)


def attention_reference(x, w, b):
    # Pure-JAX reference mirroring the PyTorch forward (bias included).
    scores = jnp.einsum("bsh,h->bs", x, w[0]) + b.reshape(())   # (B, S)
    weights = jax.nn.softmax(scores, axis=1)[..., None]         # (B, S, 1)
    return jnp.sum(weights * x, axis=1)                         # (B, H)


if __name__ == "__main__":
    B, S, H = 2, 8, 32  # batch, sequence, hidden_dim

    key = jax.random.PRNGKey(0)
    kx, kw, kb = jax.random.split(key, 3)

    x = jax.random.normal(kx, (B, S, H), dtype=jnp.float32)

    # Deterministic init of nn.Linear(hidden_dim, 1) parameters
    # (PyTorch default: uniform(-1/sqrt(H), 1/sqrt(H))).
    bound = 1.0 / (H ** 0.5)
    w = jax.random.uniform(kw, (1, H), dtype=jnp.float32, minval=-bound, maxval=bound)
    b = jax.random.uniform(kb, (1, 1), dtype=jnp.float32, minval=-bound, maxval=bound)

    out = attention_forward(x, w, b)
    jax.block_until_ready(out)

    ref = attention_reference(x, w, b)
    assert out.shape == (B, H)
    err = float(jnp.max(jnp.abs(out - ref)))
    # Tolerance covers the worst case where DEFAULT-precision f32 MXU matmuls
    # are emulated with single bf16 passes; with exact f32 emulation the
    # observed error is ~1e-6.  Real bugs show up at O(1).
    assert jnp.allclose(out, ref, atol=2e-2, rtol=2e-2), err

    print("KERNEL_OK")
</pallas_src>

<mosaic_0001>
module attributes {stable_mosaic.version = 11 : i64} {
  func.func @attention_kernel(%arg0: i32, %arg1: i32, %arg2: memref<1x8x32xf32, #tpu.memory_space<vmem>>, %arg3: memref<1x32xf32, #tpu.memory_space<vmem>>, %arg4: memref<1x1x32xf32, #tpu.memory_space<vmem>>, %arg5: memref<1x1x1xf32, #tpu.memory_space<vmem>>, %arg6: memref<1x1x1xf32, #tpu.memory_space<vmem>>, %arg7: memref<1x1x32xf32, #tpu.memory_space<vmem>>) attributes {dimension_semantics = [#tpu.dimension_semantics<parallel>, #tpu.dimension_semantics<arbitrary>], iteration_bounds = array<i64: 2, 1>, scalar_prefetch = 0 : i64, scratch_operands = 3 : i64, tpu.core_type = #tpu.core_type<tc>, window_params = [{transform_indices = @transform_0, window_bounds = array<i64: 1, 8, 32>}, {pipeline_mode = #tpu.pipeline_mode<synchronous>, transform_indices = @transform_1, window_bounds = array<i64: 1, 32>}, {transform_indices = @transform_2, window_bounds = array<i64: 1, 1, 32>}]} {
    %c0_i32 = arith.constant 0 : i32
    %0 = arith.cmpi eq, %arg1, %c0_i32 : i32
    %1 = arith.extui %0 : i1 to i32
    %c0_i32_0 = arith.constant 0 : i32
    %2 = arith.cmpi ne, %1, %c0_i32_0 : i32
    scf.if %2 {
      %cst_31 = arith.constant 0xFF800000 : f32
      %33 = vector.broadcast %cst_31 : f32 to vector<1x1x1xf32>
      %c0_32 = arith.constant 0 : index
      %c0_33 = arith.constant 0 : index
      %c0_34 = arith.constant 0 : index
      %34 = vector.load %arg5[%c0_32, %c0_33, %c0_34] : memref<1x1x1xf32, #tpu.memory_space<vmem>>, vector<1x1x1xf32>
      tpu.vector_store %arg5[%c0_32, %c0_33, %c0_34], %33 {strides = array<i32>} : memref<1x1x1xf32, #tpu.memory_space<vmem>>, vector<1x1x1xf32>,
      %cst_35 = arith.constant 0.000000e+00 : f32
      %35 = vector.broadcast %cst_35 : f32 to vector<1x1x1xf32>
      %c0_36 = arith.constant 0 : index
      %c0_37 = arith.constant 0 : index
      %c0_38 = arith.constant 0 : index
      %36 = vector.load %arg6[%c0_36, %c0_37, %c0_38] : memref<1x1x1xf32, #tpu.memory_space<vmem>>, vector<1x1x1xf32>
      tpu.vector_store %arg6[%c0_36, %c0_37, %c0_38], %35 {strides = array<i32>} : memref<1x1x1xf32, #tpu.memory_space<vmem>>, vector<1x1x1xf32>,
      %cst_39 = arith.constant 0.000000e+00 : f32
      %37 = vector.broadcast %cst_39 : f32 to vector<1x1x32xf32>
      %c0_40 = arith.constant 0 : index
      %c0_41 = arith.constant 0 : index
      %c0_42 = arith.constant 0 : index
      %38 = vector.load %arg7[%c0_40, %c0_41, %c0_42] : memref<1x1x32xf32, #tpu.memory_space<vmem>>, vector<1x1x32xf32>
      tpu.vector_store %arg7[%c0_40, %c0_41, %c0_42], %37 {strides = array<i32>} : memref<1x1x32xf32, #tpu.memory_space<vmem>>, vector<1x1x32xf32>,
    } else {
    }
    %c0 = arith.constant 0 : index
    %c0_1 = arith.constant 0 : index
    %3 = vector.load %arg3[%c0, %c0_1] : memref<1x32xf32, #tpu.memory_space<vmem>>, vector<1x32xf32>
    %4 = vector.shape_cast %3 : vector<1x32xf32> to vector<1x1x32xf32>
    %c0_2 = arith.constant 0 : index
    %c0_3 = arith.constant 0 : index
    %c0_4 = arith.constant 0 : index
    %5 = vector.load %arg2[%c0_2, %c0_3, %c0_4] : memref<1x8x32xf32, #tpu.memory_space<vmem>>, vector<1x8x32xf32>
    "tpu.trace_start"() <{level = 10 : i32, message = "bqh,bsh->bqs"}> : () -> ()
    %cst = arith.constant dense<0.000000e+00> : vector<1x1x8xf32>
    %6 = tpu.matmul %4, %5, %cst {dimension_numbers = #tpu.dot_dimension_numbers<[2], [2], [1], [1], [0, 0, 0, 1, 1, 1], [0], [0]>} : vector<1x1x32xf32>, vector<1x8x32xf32>, vector<1x1x8xf32> -> vector<1x1x8xf32>
    "tpu.trace_stop"() : () -> ()
    %c0_5 = arith.constant 0 : index
    %c0_6 = arith.constant 0 : index
    %c0_7 = arith.constant 0 : index
    %7 = vector.load %arg5[%c0_5, %c0_6, %c0_7] : memref<1x1x1xf32, #tpu.memory_space<vmem>>, vector<1x1x1xf32>
    %cst_8 = arith.constant dense<0xFF800000> : vector<1x1xf32>
    %8 = vector.multi_reduction <maximumf>, %6, %cst_8 [2] : vector<1x1x8xf32> to vector<1x1xf32>
    %9 = vector.shape_cast %8 : vector<1x1xf32> to vector<1x1x1xf32>
    %10 = arith.maximumf %7, %9 : vector<1x1x1xf32>
    %11 = arith.subf %7, %10 : vector<1x1x1xf32>
    %12 = math.exp %11 : vector<1x1x1xf32>
    %13 = vector.broadcast %10 : vector<1x1x1xf32> to vector<1x1x8xf32>
    %14 = arith.subf %6, %13 : vector<1x1x8xf32>
    %15 = math.exp %14 : vector<1x1x8xf32>
    %c0_9 = arith.constant 0 : index
    %c0_10 = arith.constant 0 : index
    %c0_11 = arith.constant 0 : index
    %16 = vector.load %arg6[%c0_9, %c0_10, %c0_11] : memref<1x1x1xf32, #tpu.memory_space<vmem>>, vector<1x1x1xf32>
    %17 = arith.mulf %12, %16 : vector<1x1x1xf32>
    %cst_12 = arith.constant dense<0.000000e+00> : vector<1x1xf32>
    %18 = vector.multi_reduction <add>, %15, %cst_12 [2] : vector<1x1x8xf32> to vector<1x1xf32>
    %19 = vector.shape_cast %18 : vector<1x1xf32> to vector<1x1x1xf32>
    %20 = arith.addf %17, %19 : vector<1x1x1xf32>
    %c0_13 = arith.constant 0 : index
    %c0_14 = arith.constant 0 : index
    %c0_15 = arith.constant 0 : index
    %21 = vector.load %arg6[%c0_13, %c0_14, %c0_15] : memref<1x1x1xf32, #tpu.memory_space<vmem>>, vector<1x1x1xf32>
    tpu.vector_store %arg6[%c0_13, %c0_14, %c0_15], %20 {strides = array<i32>} : memref<1x1x1xf32, #tpu.memory_space<vmem>>, vector<1x1x1xf32>,
    %c0_16 = arith.constant 0 : index
    %c0_17 = arith.constant 0 : index
    %c0_18 = arith.constant 0 : index
    %22 = vector.load %arg7[%c0_16, %c0_17, %c0_18] : memref<1x1x32xf32, #tpu.memory_space<vmem>>, vector<1x1x32xf32>
    %23 = vector.broadcast %12 : vector<1x1x1xf32> to vector<1x1x32xf32>
    %24 = arith.mulf %23, %22 : vector<1x1x32xf32>
    %c0_19 = arith.constant 0 : index
    %c0_20 = arith.constant 0 : index
    %c0_21 = arith.constant 0 : index
    %25 = vector.load %arg2[%c0_19, %c0_20, %c0_21] : memref<1x8x32xf32, #tpu.memory_space<vmem>>, vector<1x8x32xf32>
    "tpu.trace_start"() <{level = 10 : i32, message = "bqs,bsh->bqh"}> : () -> ()
    %cst_22 = arith.constant dense<0.000000e+00> : vector<1x1x32xf32>
    %26 = tpu.matmul %15, %25, %cst_22 {dimension_numbers = #tpu.dot_dimension_numbers<[2], [1], [1], [2], [0, 0, 0, 1, 1, 2], [0], [0]>} : vector<1x1x8xf32>, vector<1x8x32xf32>, vector<1x1x32xf32> -> vector<1x1x32xf32>
    "tpu.trace_stop"() : () -> ()
    %27 = arith.addf %24, %26 : vector<1x1x32xf32>
    %c0_23 = arith.constant 0 : index
    %c0_24 = arith.constant 0 : index
    %c0_25 = arith.constant 0 : index
    %28 = vector.load %arg7[%c0_23, %c0_24, %c0_25] : memref<1x1x32xf32, #tpu.memory_space<vmem>>, vector<1x1x32xf32>
    tpu.vector_store %arg7[%c0_23, %c0_24, %c0_25], %27 {strides = array<i32>} : memref<1x1x32xf32, #tpu.memory_space<vmem>>, vector<1x1x32xf32>,
    %c0_26 = arith.constant 0 : index
    %c0_27 = arith.constant 0 : index
    %c0_28 = arith.constant 0 : index
    %29 = vector.load %arg5[%c0_26, %c0_27, %c0_28] : memref<1x1x1xf32, #tpu.memory_space<vmem>>, vector<1x1x1xf32>
    tpu.vector_store %arg5[%c0_26, %c0_27, %c0_28], %10 {strides = array<i32>} : memref<1x1x1xf32, #tpu.memory_space<vmem>>, vector<1x1x1xf32>,
    %c0_i32_29 = arith.constant 0 : i32
    %30 = arith.cmpi eq, %arg1, %c0_i32_29 : i32
    %31 = arith.extui %30 : i1 to i32
    %c0_i32_30 = arith.constant 0 : i32
    %32 = arith.cmpi ne, %31, %c0_i32_30 : i32
    scf.if %32 {
      %c0_31 = arith.constant 0 : index
      %c0_32 = arith.constant 0 : index
      %c0_33 = arith.constant 0 : index
      %33 = vector.load %arg7[%c0_31, %c0_32, %c0_33] : memref<1x1x32xf32, #tpu.memory_space<vmem>>, vector<1x1x32xf32>
      %c0_34 = arith.constant 0 : index
      %c0_35 = arith.constant 0 : index
      %c0_36 = arith.constant 0 : index
      %34 = vector.load %arg6[%c0_34, %c0_35, %c0_36] : memref<1x1x1xf32, #tpu.memory_space<vmem>>, vector<1x1x1xf32>
      %35 = vector.broadcast %34 : vector<1x1x1xf32> to vector<1x1x32xf32>
      %36 = arith.divf %33, %35 : vector<1x1x32xf32>
      %c0_37 = arith.constant 0 : index
      %c0_38 = arith.constant 0 : index
      %c0_39 = arith.constant 0 : index
      %37 = vector.load %arg4[%c0_37, %c0_38, %c0_39] : memref<1x1x32xf32, #tpu.memory_space<vmem>>, vector<1x1x32xf32>
      tpu.vector_store %arg4[%c0_37, %c0_38, %c0_39], %36 {strides = array<i32>} : memref<1x1x32xf32, #tpu.memory_space<vmem>>, vector<1x1x32xf32>,
    } else {
    }
    return
  }
  func.func @transform_0(%arg0: i32, %arg1: i32) -> (i32, i32, i32) {
    %c0_i32 = arith.constant 0 : i32
    %c0_i32_0 = arith.constant 0 : i32
    return %arg0, %arg1, %c0_i32 : i32, i32, i32
  }
  func.func @transform_1(%arg0: i32, %arg1: i32) -> (i32, i32) {
    %c0_i32 = arith.constant 0 : i32
    %c0_i32_0 = arith.constant 0 : i32
    %c0_i32_1 = arith.constant 0 : i32
    return %c0_i32, %c0_i32_0 : i32, i32
  }
  func.func @transform_2(%arg0: i32, %arg1: i32) -> (i32, i32, i32) {
    %c0_i32 = arith.constant 0 : i32
    %c0_i32_0 = arith.constant 0 : i32
    %c0_i32_1 = arith.constant 0 : i32
    return %arg0, %c0_i32, %c0_i32_0 : i32, i32, i32
  }
}

</mosaic_0001>

<bundles_post_ra>
// kernel: tpu_custom_call.1
= control target key start
LH: loop header
LB: loop body
LE: loop exit
PB: predicated region body
PF: predicated region fallthrough
CT: control target
= control target key end

     0   :  { %7 = vsyncpa [#allocation6], 0  ;;  %s842_s0 = inlined_call_operand.hbm [shape: f32[2,8,32], index: 0, kind: input, shape index: {}]   ;;  %s843_s1 = inlined_call_operand.hbm [shape: f32[1,32], index: 1, kind: input, shape index: {}]   ;;  %s844_s2 = inlined_call_operand.hbm [shape: f32[2,1,32], index: 2, kind: output, shape index: {}]  }
   0x1   :  { %9 = vsyncpa [#allocation6 + $0x1], 0 }
   0x2   :  { %10 = vsyncpa [#allocation9], 0 }
   0x3   :  { %11 = vsyncpa [#allocation7], 0 }
   0x4   :  { %13 = vsyncpa [#allocation7 + $0x1], 0  ;;  %s683_s9 = smov 0   ;;  %s685_s10 = smov 0  }
   0x5   :  { %s687_s11 = smov 0   ;;  %s689_s12 = smov 0  }
   0x6   :  { %s691_s13 = smov 0   ;;  %s693_s14 = smov 0  }
   0x7 LB: > { %s416_s15 = sadd.s32 4294967295, %s662_s14   ;;  %s417_s16 = sadd.s32 4294967294, %s662_s14   ;;  %s662_s14 = sphi %s693_s14, %s19_s14   ;;  %s658_s13 = sphi %s691_s13, %s856_s13   ;;  %s654_s12 = sphi %s689_s12, %s855_s12   ;;  %s650_s11 = sphi %s687_s11, %s854_s11   ;;  %s646_s10 = sphi %s685_s10, %s853_s10   ;;  %s642_s9 = sphi %s683_s9, %s852_s9  }
   0x8   : > { %p53_p0 = scmp.ne.s32.totalorder %s646_s10, %s642_s9  ;;  %p717_p1 = scmp.eq.s32.totalorder %s416_s15, 0 }
   0x9   : > { %p721_p2 = scmp.eq.s32.totalorder %s416_s15, 1  ;;  %p104_p3 = scmp.eq.s32.totalorder %s417_s16, 1 }
   0xa   : > { %p727_p4 = por %p717_p1, %p53_p0  ;;  %p418_p5 = scmp.ge.s32.totalorder %s662_s14, 1 }
   0xb   : > { %p732_p6 = por %p104_p3, %p53_p0  ;;  %p111_p7 = scmp.lt.s32.totalorder %s662_s14, 3 }
   0xc   : > { %s123_s23 = sshll.u32 %s843_s1, 4  ;;  %p420_p9 = scmp.ge.s32.totalorder %s662_s14, 2  ;;  %s124_s23 = int_to_ptr.hbm [resolvable:$true] %s123_s23 }
   0xd   : > { %p740_p8 = pnand %p418_p5, %p111_p7  ;;  %s664_s25 = smov [#allocation8]  }
   0xe   : > { %s125_s26 = sshll.u32 %s664_s25, 4  ;;  %s31_s27 = sadd.s32 1, %s658_s13  ;;  %s126_s26 = int_to_ptr.vmem [resolvable:$true] %s125_s26 }
   0xf   : > { %p439_p10 = pneg %p740_p8  ;;  %p33_p12 = scmp.ge.s32.totalorder %s31_s27, 2 }
  0x10   : > { %s40_s28 = sadd.s32 1, %s650_s11  ;;  %p47_p13 = scmp.ne.s32.totalorder %s650_s11, %s646_s10 }
  0x11   : > { %p440_p11 = pnand %p439_p10, %p717_p1  ;;  %p48_p0 = scmp.eq.s32.totalorder %s662_s14, 0 }
  0x12   : > { %s858_s27 = smov (%p33_p12, %s31_s27), 0  ;;  %p762_p5 = por %p721_p2, %p47_p13 }
  0x13   : > { %442 = dma.hbm_to_vmem [thread:$0]  (!%p440_p11), %s124_s23, 16, %s126_s26, [#allocation9]  }
  0x14   : > { %p756_p3 = por %p48_p0, %p47_p13  ;;  %s35_s3 = ssub.s32 %s658_s13, %s858_s27 }
  0x15   : > { %p452_p7 = scmp.lt.s32.totalorder %s662_s14, 2  ;;  %p38_p10 = scmp.eq.s32.totalorder %s35_s3, 0 }
  0x16   : > { %s136_s4 = sand.u32 1, %s650_s11   ;;  %s422_s7 = sshll.u32 %s658_s13, 3 }
  0x17   : > { %s421_s5 = sshll.u32 %s136_s4, 3  ;;  %s145_s16 = scalar_lea.hbm %s842_s0, %s422_s7 }
  0x18   : > { %s771_s6 = scalar_select %p38_p10, %s650_s11, %s40_s28  }
  0x19   : > { %s140_s21 = scalar_lea.vmem [#allocation5], %s421_s5  ;;  %s147_s18 = sshll.u32 %s145_s16, 4  ;;  %s148_s18 = int_to_ptr.hbm [resolvable:$true] %s147_s18 }
  0x1a   : > { %s149_s22 = sshll.u32 %s140_s21, 4  ;;  %p444_p2 = pnand %p452_p7, %p756_p3  ;;  %s150_s22 = int_to_ptr.vmem [resolvable:$true] %s149_s22 }
  0x1b   : > { %s137_s23 = scalar_lea.sflag [#allocation6], %s136_s4  ;;  %158 = sbr.rel (%p740_p8) target bundleno = 678 (0x2a6), region = 28 }
  0x1c   : > { %446 = dma.hbm_to_vmem [thread:$0]  (!%p444_p2), %s148_s18, 128, %s150_s22, %s137_s23  }
  0x1d   : > { %s782_s25 = sand.u32 (!%p740_p8), 1, %s646_s10  }
  0x1e   : > { %s424_s26 = sshll.u32 (!%p740_p8), %s782_s25, 3  ;;  %s161_s28 = scalar_lea.sflag (!%p740_p8), [#allocation6], %s782_s25 }
  0x1f   : > { %s164_s3 = scalar_lea.vmem (!%p740_p8), [#allocation5], %s424_s26 }
  0x20   : > { %629 = dma.done.wait (%p727_p4), %s161_s28, 128  }
  0x21   : > { %631 = vsyncadd (%p727_p4), %s161_s28, 4294967168 }
  0x22   : > { %633 = dma.done.wait (%p717_p1), [#allocation9], 16  }
  0x23   : > { %635 = vsyncadd (%p717_p1), [#allocation9], 4294967280  ;;  %vm201_vm0 = vcmask 261120   ;;  %v200_v0 = vld [vmem:[%s164_s3] sm:$0xff]  ;;  %v199_v1 = vld [vmem:[#allocation8] sm:$0x1]  ;;  %s327_s24 = scalar_lea.hbm %s844_s2, %s654_s12 }
  0x24   : > { %426 = vmatpush.xpose.msk.msra.mxu0 %vm201_vm0, %v200_v0  ;;  %282 = vmatpush.msra.mxu1 %v200_v0  ;;  %vm194_vm1 = vcmask 0   ;;  %v665_v2 = vmov -inf   ;;  %vm229_vm2 = vcmask 57344   ;;  %v666_v5 = vmov 0   ;;  %s189_s29 = scalar_lea.vmem [#allocation10], %s782_s25  ;;  %s331_s5 = sshll.u32 %s327_s24, 4  ;;  %s332_s5 = int_to_ptr.hbm [resolvable:$true] %s331_s5 }
  0x25   : > { %195 = vst.msk [vmem:[#allocation2] sm:$0x1] %vm194_vm1, %v665_v2  ;;  %507 = vset.pattern.permute.xlu0 %v666_v5  ;;  %509 = vset.pattern.permute.xlu2 %v666_v5  ;;  %v667_v6 = vmov 0.0   ;;  %vm197_vm3 = vcmask 253952   ;;  %vm263_vm4 = vcmask 64512   ;;  %s329_s4 = sshll.u32 %s189_s29, 4  ;;  %s330_s4 = int_to_ptr.vmem [resolvable:$true] %s329_s4 }
  0x26   : > { %508 = vset.pattern.permute.xlu1 %v666_v5  ;;  %196 = vst.msk [vmem:[#allocation3] sm:$0x1] %vm194_vm1, %v667_v6  ;;  %s319_s7 = scalar_lea.sflag [#allocation7], %s782_s25  ;;  %s590_s12 = sshra.s32 %s332_s5, 4  ;;  %s591_s12 = int_to_ptr.hbm [resolvable:$true] %s590_s12 }
  0x27   : > { %427 = vmatmul.msk.f32.vlgmr.msra.gmra.mxu0 %vm201_vm0, %v199_v1  ;;  %198 = vst.msk [vmem:[#allocation4] sm:$0x1] %vm197_vm3, %v667_v6  ;;  %s592_s8 = scalar_lea.hbm %s591_s12, 1  ;;  %s596_s21 = scalar_lea.hbm %s844_s2, 2 }
  0x28   : > { %p593_p1 = scmp.ne.s32.totalorder %s591_s12, %s592_s8  ;;  %p597_p11 = scmp.lt.s32.totalorder %s591_s12, %s844_s2 }
  0x29   : > { %p598_p12 = scmp.lt.s32.totalorder %s596_s21, %s592_s8 }
  0x2a   : > { %p594_p4 = pnand %p593_p1, %p762_p5 }
  0x2b   : > { %p599_p13 = por %p598_p12, %p597_p11 }
  0x2c   : > { %v228_v7 = vld [vmem:[#allocation2] sm:$0x1]  ;;  %p595_p8 = pneg %p594_p4 }
  0x2d   : > { %v246_v19 = vld [vmem:[#allocation3] sm:$0x1] }
  0x2e   : > { %v254_v25 = vld [vmem:[#allocation4] sm:$0x1]  ;;  %p600_p0 = pnand %p599_p13, %p595_p8 }
  0xa4   : > { %v225_v3 = vpop.f32.mrf.mxu0 }
  0xa5   : > { %v230_v4 = vsel %vm229_vm2, %v225_v3, -inf }
  0xa6   : > { %231 = vmax.xlane.f32.xlu0 %v230_v4 }
 0x119   : > { %v232_v8 = vpop.xlane.xlu0 %231 }
 0x11a   : > { %v233_v9 = vmax.f32 %v228_v7, %v232_v8 }
 0x11c   : > { %v234_v10 = vsub.f32 %v228_v7, %v233_v9  ;;  %290 = vst.msk [vmem:[#allocation2] sm:$0x1] %vm194_vm1, %v233_v9  ;;  %239 = vperm.xlu0 %507, %v233_v9  }
 0x11e   : > { %v235_v11 = vmul.f32 1.442695, %v234_v10 }
 0x120   : > { %510 = vpow2.f32 %v235_v11 }
 0x126   : > { %v511_v12 = vpop.eup %510 }
 0x127   : > { %257 = vperm.xlu2 %509, %v511_v12   ;;  %v247_v20 = vmul.f32 %v511_v12, %v246_v19 }
 0x181   : > { %v258_v22 = vpop.permute.xlu2 %257 }
 0x182   : > { %v260_v24 = vperm.slane %v258_v22, 0 }
 0x184   : > { %v261_v26 = vmul.f32 %v260_v24, %v254_v25 }
 0x18e   : > { %v240_v13 = vpop.permute.xlu0 %239 }
 0x18f   : > { %v242_v14 = vperm.slane %v240_v13, 0 }
 0x191   : > { %v243_v15 = vsub.f32 %v225_v3, %v242_v14 }
 0x193   : > { %v244_v16 = vmul.f32 1.442695, %v243_v15 }
 0x195   : > { %512 = vpow2.f32 %v244_v16 }
 0x19b   : > { %v513_v17 = vpop.eup %512 }
 0x19c   : > { %428 = vmatmul.msk.f32.vlgmr.msra.gmra.mxu1 %vm263_vm4, %v513_v17  ;;  %v248_v18 = vsel %vm229_vm2, %v513_v17, 0.0 }
 0x19d   : > { %249 = vadd.xlane.f32.xlu1 %v248_v18 }
 0x210   : > { %v250_v21 = vpop.xlane.xlu1 %249 }
 0x211   : > { %v251_v23 = vadd.f32 %v250_v21, %v247_v20 }
 0x213   : > { %253 = vst.msk [vmem:[#allocation3] sm:$0x1] %vm194_vm1, %v251_v23 }
 0x219   : > { %v284_v27 = vpop.f32.mrf.mxu1 }
 0x21a   : > { %v287_v28 = vadd.f32 %v284_v27, %v261_v26  ;;  %v295_v29 = vld [vmem:[#allocation3] sm:$0x1] }
 0x21b   : > { %298 = vperm.xlu1 %508, %v295_v29  }
 0x21c   : > { %289 = vst.msk [vmem:[#allocation4] sm:$0x1] %vm197_vm3, %v287_v28 }
 0x223   : > { %v294_v41 = vld [vmem:[#allocation4] sm:$0x1] }
 0x28d   : > { %v299_v30 = vpop.permute.xlu1 %298 }
 0x28e   : > { %v301_v31 = vperm.slane %v299_v30, 0 }
 0x290   : > { %514 = vrcp.f32 %v301_v31  ;;  %v313_v35 = vand.u32 2147483648, %v301_v31  ;;  %v311_v37 = vand.u32 2147483647, %v301_v31  ;;  %vm307_vm6 = vweird.f32 %v301_v31 }
 0x292   : > { %v314_v39 = vor.u32 1.1754944e-38, %v313_v35  ;;  %vm312_vm8 = vcmp.eq.f32.partialorder %v311_v37, 8.507059e+37 }
 0x296   : > { %v515_v32 = vpop.eup %514 }
 0x297   : > { %v303_v33 = vmul.f32 %v515_v32, %v301_v31  ;;  %vm308_vm5 = vweird.f32 %v515_v32 }
 0x298   : > { %vm309_vm7 = vmor %vm307_vm6, %vm308_vm5 }
 0x299   : > { %v304_v34 = vsub.f32 1.0, %v303_v33 }
 0x29b   : > { %v305_v36 = vmul.f32 %v515_v32, %v304_v34 }
 0x29d   : > { %v306_v38 = vadd.f32 %v515_v32, %v305_v36 }
 0x29f   : > { %v310_v40 = vsel %vm309_vm7, %v515_v32, %v306_v38 }
 0x2a0   : > { %v315_v42 = vsel %vm312_vm8, %v314_v39, %v310_v40 }
 0x2a1   : > { %v316_v43 = vmul.f32 %v315_v42, %v294_v41 }
 0x2a3   : > { %317 = vst.msk [vmem:[%s189_s29] sm:$0x1] %vm197_vm3, %v316_v43 }
 0x2a4   : > { %603 = shalt.err (!%p600_p0)
}
 0x2a5   : > { %437 = dma.vmem_to_hbm [thread:$0]  (%p762_p5), %s330_s4, 16, %s332_s5, %s319_s7  }
 0x2a6 PF: > { %s343_s23 = sand.u32 1, %s642_s9   ;;  %p448_p3 = pnand %p420_p9, %p732_p6 }
 0x2a7   : > { %s344_s25 = scalar_lea.sflag [#allocation7], %s343_s23 }
 0x2a8   : > { %p449_p7 = pneg %p448_p3 }
 0x2aa   : > { %637 = dma.done.wait (%p449_p7), %s344_s25, 16  }
 0x2ab   : > { %639 = vsyncadd (%p449_p7), %s344_s25, 4294967280  ;;  %s19_s14 = sadd.s32 1, %s662_s14   ;;  %s852_s9 = smov %s646_s10 }
 0x2ac   : > { %p16_p10 = scmp.ge.s32.totalorder %s19_s14, 4   ;;  %s853_s10 = smov %s650_s11 }
 0x2ad   : > { %s854_s11 = smov %s771_s6  ;;  %s855_s12 = smov %s658_s13 }
 0x2ae   : > { %s856_s13 = smov %s858_s27  ;;  %18 = sbr.rel (!%p16_p10) target bundleno = 7 (0x7), region = 85 }
 0x2b3   :  { %349 = vsyncpa [#allocation6], 1 }
 0x2b4   :  { %351 = vsyncpa [#allocation6 + $0x1], 1 }
 0x2b5   :  { %352 = vsyncpa [#allocation9], 1 }
 0x2b6   :  { %353 = vsyncpa [#allocation7], 1 }
 0x2b7   :  { %355 = vsyncpa [#allocation7 + $0x1], 1 }

</bundles_post_ra>
